<compile_context>
chip_gen: v7x
topology: tpu7x:2x2x1
jax: 0.10.0
libtpu: 0.0.40
codegen_flags: <defaults>
</compile_context>

<pallas_src>
import jax
import jax.numpy as jnp
from jax.experimental import pallas as pl
from jax.experimental.pallas import tpu as pltpu


def _round_up(n: int, m: int) -> int:
    return ((n + m - 1) // m) * m


def policy_kernel(x_ref, w1_ref, b1_ref, w2_ref, b2_ref, out_ref):
    # Fused hot path: two MXU matmuls (f32 accumulation) + ReLU + numerically
    # stable softmax over the lane-dense (padded) action axis, all in VMEM.
    h = jnp.dot(x_ref[...], w1_ref[...], preferred_element_type=jnp.float32) + b1_ref[...]
    h = jnp.maximum(h, 0.0)                                       # ReLU (f32, VPU)
    # b2 already carries -1e30 in the padded action lanes (w2 padded cols are 0),
    # so no explicit mask is needed here.
    logits = jnp.dot(h.astype(w2_ref.dtype), w2_ref[...],
                     preferred_element_type=jnp.float32) + b2_ref[...]

    # softmax over dim=1 (action axis == last axis of the 2-D logits)
    m = jnp.max(logits, axis=-1, keepdims=True)
    e = jnp.exp(logits - m)
    denom = jnp.sum(e, axis=-1, keepdims=True)
    out_ref[...] = e / denom            # exact divide: rows sum to 1 to f32 rounding


def prepare_params(w1, b1, w2, b2, *, use_bf16=False):
    """One-time layout prep (call once, reuse across rollout steps)."""
    A = w2.shape[1]
    A_PAD = _round_up(A, 128)                                   # lane-dense output slab
    w1_p = w1.astype(jnp.float32)
    b1_p = b1.astype(jnp.float32)
    w2_p = jnp.pad(w2.astype(jnp.float32), ((0, 0), (0, A_PAD - A)))
    # Fold the padded-action mask into b2; keep b2 in f32 (never cast: -1e30
    # would overflow bf16 to -inf).
    b2_p = jnp.pad(b2.astype(jnp.float32), ((0, 0), (0, A_PAD - A)),
                   constant_values=-1e30)
    if use_bf16:
        # bf16 MXU operands (full rate on v5e/v6e/v7x); f32 accumulation kept.
        w1_p = w1_p.astype(jnp.bfloat16)
        w2_p = w2_p.astype(jnp.bfloat16)
    return dict(w1=w1_p, b1=b1_p, w2=w2_p, b2=b2_p, A=A, use_bf16=use_bf16)


def policy_network_forward(x, params):
    """x: (B, obs); returns (B, action_space) softmax probabilities (float32)."""
    w1, b1, w2, b2 = params["w1"], params["b1"], params["w2"], params["b2"]
    A, use_bf16 = params["A"], params["use_bf16"]
    B, obs = x.shape
    H = w1.shape[1]
    A_PAD = w2.shape[1]

    # Batch tiling: large tiles (grid-step overhead dominates at these shapes),
    # pad only to the sublane multiple, partial last tile handled by cdiv grid.
    align = 16 if use_bf16 else 8                 # bf16 packs 16 sublanes / vreg
    B_pad = _round_up(B, align)
    TB = min(1024, B_pad)
    # v7x megacore: make sure medium batches land on both TensorCores.
    if B_pad > align and pl.cdiv(B_pad, TB) == 1:
        TB = _round_up(pl.cdiv(B_pad, 2), align)
    grid = (pl.cdiv(B_pad, TB),)

    x_p = x.astype(jnp.float32)
    if B_pad != B:
        x_p = jnp.pad(x_p, ((0, B_pad - B), (0, 0)))
    if use_bf16:
        x_p = x_p.astype(jnp.bfloat16)

    out = pl.pallas_call(
        policy_kernel,
        out_shape=jax.ShapeDtypeStruct((B_pad, A_PAD), jnp.float32),
        grid_spec=pltpu.PrefetchScalarGridSpec(
            num_scalar_prefetch=0,
            grid=grid,
            in_specs=[
                # x streams per batch tile
                pl.BlockSpec((TB, obs), lambda i: (i, 0)),
                # weights/biases: constant index_map -> resident in VMEM across grid
                pl.BlockSpec((obs, H), lambda i: (0, 0)),
                pl.BlockSpec((1, H), lambda i: (0, 0)),
                pl.BlockSpec((H, A_PAD), lambda i: (0, 0)),
                pl.BlockSpec((1, A_PAD), lambda i: (0, 0)),
            ],
            out_specs=pl.BlockSpec((TB, A_PAD), lambda i: (i, 0)),
        ),
        compiler_params=pltpu.CompilerParams(
            # Independent batch tiles -> shard across TensorCores (2 TCs on v7x).
            dimension_semantics=("parallel",),
        ),
    )(x_p, w1, b1, w2, b2)

    # Slice back to module semantics. (For large rollouts, consider consuming
    # the padded (B_pad, A_PAD) slab directly to skip this extra HBM pass.)
    return out[:B, :A]


def init_params(key, observation_space, action_space, hidden=128):
    # Deterministic init mirroring nn.Linear's U(-1/sqrt(fan_in), 1/sqrt(fan_in)).
    k1, k2, k3, k4 = jax.random.split(key, 4)
    bound1 = 1.0 / jnp.sqrt(observation_space)
    bound2 = 1.0 / jnp.sqrt(hidden)
    w1 = jax.random.uniform(k1, (observation_space, hidden), jnp.float32, -bound1, bound1)
    b1 = jax.random.uniform(k2, (1, hidden), jnp.float32, -bound1, bound1)
    w2 = jax.random.uniform(k3, (hidden, action_space), jnp.float32, -bound2, bound2)
    b2 = jax.random.uniform(k4, (1, action_space), jnp.float32, -bound2, bound2)
    return w1, b1, w2, b2


if __name__ == "__main__":
    key = jax.random.PRNGKey(0)
    kx, kp = jax.random.split(key)

    batch = 8
    observation_space = 20   # e.g. 10 TSP cities x 2 coords flattened
    action_space = 10

    x = jax.random.normal(kx, (batch, observation_space), jnp.float32)
    w1, b1, w2, b2 = init_params(kp, observation_space, action_space)

    # Pad/cast weights once; reuse across all forward calls in the rollout loop.
    params = prepare_params(w1, b1, w2, b2, use_bf16=False)

    probs = policy_network_forward(x, params)
    probs = jax.block_until_ready(probs)

    # Pure-JAX reference check of the fused kernel.
    h_ref = jnp.maximum(x @ w1 + b1, 0.0)
    ref = jax.nn.softmax(h_ref @ w2 + b2, axis=1)
    assert probs.shape == (batch, action_space)
    assert jnp.allclose(probs, ref, atol=2e-3, rtol=2e-3)
    # Exact softmax divide -> rows sum to 1 up to f32 rounding.
    assert jnp.allclose(jnp.sum(probs, axis=1), 1.0, atol=1e-3)

    print("KERNEL_OK")
</pallas_src>

<mosaic_0001>
module attributes {stable_mosaic.version = 11 : i64} {
  func.func @policy_kernel(%arg0: i32, %arg1: memref<8x20xf32, #tpu.memory_space<vmem>>, %arg2: memref<20x128xf32, #tpu.memory_space<vmem>>, %arg3: memref<1x128xf32, #tpu.memory_space<vmem>>, %arg4: memref<128x128xf32, #tpu.memory_space<vmem>>, %arg5: memref<1x128xf32, #tpu.memory_space<vmem>>, %arg6: memref<8x128xf32, #tpu.memory_space<vmem>>) attributes {dimension_semantics = [#tpu.dimension_semantics<parallel>], iteration_bounds = array<i64: 1>, scalar_prefetch = 0 : i64, scratch_operands = 0 : i64, tpu.core_type = #tpu.core_type<tc>, window_params = [{transform_indices = @transform_0, window_bounds = array<i64: 8, 20>}, {pipeline_mode = #tpu.pipeline_mode<synchronous>, transform_indices = @transform_1, window_bounds = array<i64: 20, 128>}, {pipeline_mode = #tpu.pipeline_mode<synchronous>, transform_indices = @transform_2, window_bounds = array<i64: 1, 128>}, {pipeline_mode = #tpu.pipeline_mode<synchronous>, transform_indices = @transform_3, window_bounds = array<i64: 128, 128>}, {pipeline_mode = #tpu.pipeline_mode<synchronous>, transform_indices = @transform_4, window_bounds = array<i64: 1, 128>}, {transform_indices = @transform_5, window_bounds = array<i64: 8, 128>}]} {
    %c0 = arith.constant 0 : index
    %c0_0 = arith.constant 0 : index
    %0 = vector.load %arg1[%c0, %c0_0] : memref<8x20xf32, #tpu.memory_space<vmem>>, vector<8x20xf32>
    %c0_1 = arith.constant 0 : index
    %c0_2 = arith.constant 0 : index
    %1 = vector.load %arg2[%c0_1, %c0_2] : memref<20x128xf32, #tpu.memory_space<vmem>>, vector<20x128xf32>
    %cst = arith.constant dense<0.000000e+00> : vector<8x128xf32>
    %2 = tpu.matmul %0, %1, %cst {dimension_numbers = #tpu.dot_dimension_numbers<[1], [0], [0], [1], [0, 0, 1, 1], [], []>} : vector<8x20xf32>, vector<20x128xf32>, vector<8x128xf32> -> vector<8x128xf32>
    %c0_3 = arith.constant 0 : index
    %c0_4 = arith.constant 0 : index
    %3 = vector.load %arg3[%c0_3, %c0_4] : memref<1x128xf32, #tpu.memory_space<vmem>>, vector<1x128xf32>
    %4 = vector.broadcast %3 : vector<1x128xf32> to vector<8x128xf32>
    %5 = arith.addf %2, %4 : vector<8x128xf32>
    %cst_5 = arith.constant 0.000000e+00 : f32
    %6 = vector.broadcast %cst_5 : f32 to vector<8x128xf32>
    %7 = arith.maximumf %5, %6 : vector<8x128xf32>
    %c0_6 = arith.constant 0 : index
    %c0_7 = arith.constant 0 : index
    %8 = vector.load %arg4[%c0_6, %c0_7] : memref<128x128xf32, #tpu.memory_space<vmem>>, vector<128x128xf32>
    %cst_8 = arith.constant dense<0.000000e+00> : vector<8x128xf32>
    %9 = tpu.matmul %7, %8, %cst_8 {dimension_numbers = #tpu.dot_dimension_numbers<[1], [0], [0], [1], [0, 0, 1, 1], [], []>} : vector<8x128xf32>, vector<128x128xf32>, vector<8x128xf32> -> vector<8x128xf32>
    %c0_9 = arith.constant 0 : index
    %c0_10 = arith.constant 0 : index
    %10 = vector.load %arg5[%c0_9, %c0_10] : memref<1x128xf32, #tpu.memory_space<vmem>>, vector<1x128xf32>
    %11 = vector.broadcast %10 : vector<1x128xf32> to vector<8x128xf32>
    %12 = arith.addf %9, %11 : vector<8x128xf32>
    %cst_11 = arith.constant dense<0xFF800000> : vector<8xf32>
    %13 = vector.multi_reduction <maximumf>, %12, %cst_11 [1] : vector<8x128xf32> to vector<8xf32>
    %14 = vector.shape_cast %13 : vector<8xf32> to vector<8x1xf32>
    %15 = vector.broadcast %14 : vector<8x1xf32> to vector<8x128xf32>
    %16 = arith.subf %12, %15 : vector<8x128xf32>
    %17 = math.exp %16 : vector<8x128xf32>
    %cst_12 = arith.constant dense<0.000000e+00> : vector<8xf32>
    %18 = vector.multi_reduction <add>, %17, %cst_12 [1] : vector<8x128xf32> to vector<8xf32>
    %19 = vector.shape_cast %18 : vector<8xf32> to vector<8x1xf32>
    %20 = vector.broadcast %19 : vector<8x1xf32> to vector<8x128xf32>
    %21 = arith.divf %17, %20 : vector<8x128xf32>
    %c0_13 = arith.constant 0 : index
    %c0_14 = arith.constant 0 : index
    %22 = vector.load %arg6[%c0_13, %c0_14] : memref<8x128xf32, #tpu.memory_space<vmem>>, vector<8x128xf32>
    tpu.vector_store %arg6[%c0_13, %c0_14], %21 {strides = array<i32>} : memref<8x128xf32, #tpu.memory_space<vmem>>, vector<8x128xf32>,
    return
  }
  func.func @transform_0(%arg0: i32) -> (i32, i32) {
    %c0_i32 = arith.constant 0 : i32
    %c0_i32_0 = arith.constant 0 : i32
    return %arg0, %c0_i32 : i32, i32
  }
  func.func @transform_1(%arg0: i32) -> (i32, i32) {
    %c0_i32 = arith.constant 0 : i32
    %c0_i32_0 = arith.constant 0 : i32
    %c0_i32_1 = arith.constant 0 : i32
    return %c0_i32, %c0_i32_0 : i32, i32
  }
  func.func @transform_2(%arg0: i32) -> (i32, i32) {
    %c0_i32 = arith.constant 0 : i32
    %c0_i32_0 = arith.constant 0 : i32
    %c0_i32_1 = arith.constant 0 : i32
    return %c0_i32, %c0_i32_0 : i32, i32
  }
  func.func @transform_3(%arg0: i32) -> (i32, i32) {
    %c0_i32 = arith.constant 0 : i32
    %c0_i32_0 = arith.constant 0 : i32
    %c0_i32_1 = arith.constant 0 : i32
    return %c0_i32, %c0_i32_0 : i32, i32
  }
  func.func @transform_4(%arg0: i32) -> (i32, i32) {
    %c0_i32 = arith.constant 0 : i32
    %c0_i32_0 = arith.constant 0 : i32
    %c0_i32_1 = arith.constant 0 : i32
    return %c0_i32, %c0_i32_0 : i32, i32
  }
  func.func @transform_5(%arg0: i32) -> (i32, i32) {
    %c0_i32 = arith.constant 0 : i32
    %c0_i32_0 = arith.constant 0 : i32
    return %arg0, %c0_i32 : i32, i32
  }
}

</mosaic_0001>

<bundles_post_ra>
// kernel: tpu_custom_call.1
= control target key start
LH: loop header
LB: loop body
LE: loop exit
PB: predicated region body
PF: predicated region fallthrough
CT: control target
= control target key end

     0   :  { %10 = vsyncpa [#allocation3], 0  ;;  %s571_s0 = inlined_call_operand.hbm [shape: f32[8,20], index: 0, kind: input, shape index: {}]   ;;  %s572_s1 = inlined_call_operand.hbm [shape: f32[20,128], index: 1, kind: input, shape index: {}]   ;;  %s573_s2 = inlined_call_operand.vmem [shape: f32[1,128], index: 2, kind: input, shape index: {}]   ;;  %s574_s3 = inlined_call_operand.hbm [shape: f32[128,128], index: 3, kind: input, shape index: {}]   ;;  %s575_s4 = inlined_call_operand.vmem [shape: f32[1,128], index: 4, kind: input, shape index: {}]   ;;  %s576_s5 = inlined_call_operand.hbm [shape: f32[8,128], index: 5, kind: output, shape index: {}]  }
   0x1   :  { %11 = vsyncpa [#allocation6], 0 }
   0x2   :  { %12 = vsyncpa [#allocation4], 0  ;;  %s472_s18 = smov [#allocation5]   ;;  %s378_s22 = scalar_lea.hbm %s572_s1, 384 }
   0x3   :  { %s28_s19 = sshll.u32 %s472_s18, 4  ;;  %p379_p0 = scmp.ne.s32.totalorder %s572_s1, %s378_s22  ;;  %s29_s19 = int_to_ptr.vmem [resolvable:$true] %s28_s19 }
   0x4   :  { %p382_p1 = scmp.lt.u32.totalorder %s378_s22, %s572_s1 }
   0x6   :  { %p384_p2 = pnand %p382_p1, %p379_p0 }
   0x8   :  { %387 = shalt.err (!%p384_p2)
}
   0x9   :  { %s388_s27 = scalar_lea.vmem %s29_s19, 384  ;;  %p393_p4 = scmp.lt.s32.totalorder %s29_s19, %s29_s19 }
   0xa   :  { %p389_p3 = scmp.ne.s32.totalorder %s29_s19, %s388_s27  ;;  %p394_p5 = scmp.lt.s32.totalorder %s388_s27, %s388_s27 }
   0xc   :  { %p395_p6 = por %p394_p5, %p393_p4 }
   0xe   :  { %p396_p7 = pnand %p395_p6, %p389_p3 }
  0x10   :  { %399 = shalt.err (!%p396_p7)
}
  0x11   :  { %s473_s28 = smov 128   ;;  %s474_s29 = smov 8  }
  0x12   :  { %34 = dma.hbm_to_vmem [thread:$0]  %s572_s1, 384, %s29_s19, [#allocation6], %s473_s28, %s473_s28, %s474_s29  }
  0x13   :  { %s475_s7 = smov [#allocation2]   ;;  %s476_s9 = smov [#allocation7]  }
  0x14   :  { %s19_s8 = sshll.u32 %s475_s7, 4  ;;  %s42_s10 = sshll.u32 %s476_s9, 4  ;;  %s20_s8 = int_to_ptr.vmem [resolvable:$true] %s19_s8  ;;  %s43_s10 = int_to_ptr.vmem [resolvable:$true] %s42_s10 }
  0x15   :  { %s400_s13 = scalar_lea.hbm %s571_s0, 128 }
  0x16   :  { %p401_p8 = scmp.ne.s32.totalorder %s571_s0, %s400_s13  ;;  %p404_p9 = scmp.lt.u32.totalorder %s400_s13, %s571_s0 }
  0x18   :  { %p406_p10 = pnand %p404_p9, %p401_p8 }
  0x1a   :  { %409 = shalt.err (!%p406_p10)
}
  0x1b   :  { %s410_s1 = scalar_lea.vmem %s20_s8, 128  ;;  %p415_p12 = scmp.lt.s32.totalorder %s20_s8, %s20_s8 }
  0x1c   :  { %p411_p11 = scmp.ne.s32.totalorder %s20_s8, %s410_s1  ;;  %p416_p13 = scmp.lt.s32.totalorder %s410_s1, %s410_s1 }
  0x1e   :  { %p417_p0 = por %p416_p13, %p415_p12 }
  0x20   :  { %p418_p1 = pnand %p417_p0, %p411_p11 }
  0x22   :  { %421 = shalt.err (!%p418_p1)
}
  0x23   :  { %22 = dma.hbm_to_vmem [thread:$0]  %s571_s0, 128, %s20_s8, [#allocation3]  }
  0x24   :  { %s422_s22 = scalar_lea.hbm %s574_s3, 2048 }
  0x25   :  { %p423_p2 = scmp.ne.s32.totalorder %s574_s3, %s422_s22  ;;  %p426_p3 = scmp.lt.u32.totalorder %s422_s22, %s574_s3 }
  0x27   :  { %p428_p4 = pnand %p426_p3, %p423_p2 }
  0x29   :  { %431 = shalt.err (!%p428_p4)
}
  0x2a   :  { %s432_s27 = scalar_lea.vmem %s43_s10, 2048  ;;  %p437_p6 = scmp.lt.s32.totalorder %s43_s10, %s43_s10 }
  0x2b   :  { %p433_p5 = scmp.ne.s32.totalorder %s43_s10, %s432_s27  ;;  %p438_p7 = scmp.lt.s32.totalorder %s432_s27, %s432_s27 }
  0x2d   :  { %p439_p8 = por %p438_p7, %p437_p6 }
  0x2f   :  { %p440_p9 = pnand %p439_p8, %p433_p5 }
  0x31   :  { %443 = shalt.err (!%p440_p9)
}
  0x32   :  { %48 = dma.hbm_to_vmem [thread:$0]  %s574_s3, 2048, %s43_s10, [#allocation6], %s473_s28, %s473_s28, %s474_s29  }
  0x33   :  { %466 = dma.done.wait [#allocation3], 128  }
  0x34   :  { %467 = vsyncadd [#allocation3], 4294967168 }
  0x35   :  { %468 = dma.done.wait [#allocation6], 2432  }
  0x36   :  { %469 = vsyncadd [#allocation6], 4294964864  ;;  %v477_v0 = vmov 0.0|0.0   ;;  %vm478_vm0 = vmmov 0   ;;  %v479_v1 = vmov 0.0   ;;  %v61_v2 = vld [vmem:[#allocation5] sm:$0xff] }
  0x37   :  { %338 = vmatprep.subr.bf16.mxu0 %v477_v0  ;;  %300 = vmatprep.mubr.msk.f32.mxu0 %vm478_vm0, %v479_v1  ;;  %v62_v3 = vld [vmem:[#allocation5 + $0x8] sm:$0xff]  ;;  %v150_v5 = vld [vmem:[#allocation7] sm:$0xff]  ;;  %v151_v6 = vld [vmem:[#allocation7 + $0x8] sm:$0xff]  ;;  %vm75_vm1 = vcmask 1043456   ;;  %vm71_vm2 = vcmask 162816  }
  0x38   :  { %341 = vmatprep.subr.bf16.mxu1 %v477_v0  ;;  %335 = vmatprep.mubr.msk.f32.mxu1 %vm478_vm0, %v479_v1  ;;  %v339_v4 = vpack.c.bf16 %v62_v3, %v61_v2  ;;  %v342_v7 = vpack.c.bf16 %v151_v6, %v150_v5  ;;  %v152_v8 = vld [vmem:[#allocation7 + $0x10] sm:$0xff]  ;;  %v153_v9 = vld [vmem:[#allocation7 + $0x18] sm:$0xff]  ;;  %v60_v12 = vld [vmem:[#allocation2] sm:$0xff] }
  0x39   :  { %v63_v10 = vld [vmem:[#allocation5 + $0x10] sm:$0xf]  ;;  %v345_v11 = vpack.c.bf16 %v153_v9, %v152_v8  ;;  %v154_v13 = vld [vmem:[#allocation7 + $0x20] sm:$0xff]  ;;  %v155_v14 = vld [vmem:[#allocation7 + $0x28] sm:$0xff] }
  0x3a   :  { %340 = vmatpush3.bf16.msra.mxu0 %v339_v4  ;;  %343 = vmatpush3.bf16.msra.mxu1 %v342_v7  ;;  %v348_v15 = vpack.c.bf16 %v155_v14, %v154_v13  ;;  %v156_v16 = vld [vmem:[#allocation7 + $0x30] sm:$0xff]  ;;  %v157_v17 = vld [vmem:[#allocation7 + $0x38] sm:$0xff]  ;;  %v158_v19 = vld [vmem:[#allocation7 + $0x40] sm:$0xff] }
  0x3b   :  { %298 = vmatprep.subr.mxu0 %v479_v1  ;;  %344 = vmatprep.subr.bf16.mxu1 %v477_v0  ;;  %v351_v18 = vpack.c.bf16 %v157_v17, %v156_v16  ;;  %v159_v20 = vld [vmem:[#allocation7 + $0x48] sm:$0xff]  ;;  %v160_v22 = vld [vmem:[#allocation7 + $0x50] sm:$0xff]  ;;  %v161_v23 = vld [vmem:[#allocation7 + $0x58] sm:$0xff] }
  0x3c   :  { %v354_v21 = vpack.c.bf16 %v159_v20, %v158_v19  ;;  %v357_v24 = vpack.c.bf16 %v161_v23, %v160_v22  ;;  %v162_v25 = vld [vmem:[#allocation7 + $0x60] sm:$0xff]  ;;  %v163_v26 = vld [vmem:[#allocation7 + $0x68] sm:$0xff]  ;;  %v164_v28 = vld [vmem:[#allocation7 + $0x70] sm:$0xff] }
  0x3d   :  { %v360_v27 = vpack.c.bf16 %v163_v26, %v162_v25  ;;  %v165_v29 = vld [vmem:[#allocation7 + $0x78] sm:$0xff]  ;;  %v269_v31 = vld [vmem:[%s573_s2] ss:$0 sm:$0xff]  ;;  %s480_s2 = smov [#allocation8]  }
  0x3e   :  { %299 = vmatpush3.msk.msra.mxu0 %vm75_vm1, %v63_v10  ;;  %346 = vmatpush3.bf16.msra.mxu1 %v345_v11  ;;  %v363_v30 = vpack.c.bf16 %v165_v29, %v164_v28  ;;  %v272_v36 = vld [vmem:[%s575_s4] ss:$0 sm:$0xff]  ;;  %s259_s7 = sshll.u32 %s480_s2, 4  ;;  %s260_s7 = int_to_ptr.vmem [resolvable:$true] %s259_s7 }
  0x3f   :  { %301 = vmatmul.mubr.msk.f32.vlgmr.msra.gmra.mrb[0].mxu0 %vm71_vm2, %v60_v12  ;;  %347 = vmatprep.subr.bf16.mxu1 %v477_v0  ;;  %s444_s8 = scalar_lea.vmem %s260_s7, 128  ;;  %p449_p11 = scmp.lt.s32.totalorder %s260_s7, %s260_s7 }
  0x40   :  { %p445_p10 = scmp.ne.s32.totalorder %s260_s7, %s444_s8  ;;  %p450_p12 = scmp.lt.s32.totalorder %s444_s8, %s444_s8 }
  0x42   :  { %349 = vmatpush3.bf16.msra.mxu1 %v348_v15  ;;  %p451_p13 = por %p450_p12, %p449_p11 }
  0x43   :  { %350 = vmatprep.subr.bf16.mxu1 %v477_v0 }
  0x44   :  { %p452_p0 = pnand %p451_p13, %p445_p10 }
  0x46   :  { %352 = vmatpush3.bf16.msra.mxu1 %v351_v18 }
  0x47   :  { %353 = vmatprep.subr.bf16.mxu1 %v477_v0 }
  0x4a   :  { %355 = vmatpush3.bf16.msra.mxu1 %v354_v21 }
  0x4b   :  { %356 = vmatprep.subr.bf16.mxu1 %v477_v0 }
  0x4e   :  { %358 = vmatpush3.bf16.msra.mxu1 %v357_v24 }
  0x4f   :  { %359 = vmatprep.subr.bf16.mxu1 %v477_v0 }
  0x52   :  { %361 = vmatpush3.bf16.msra.mxu1 %v360_v27 }
  0x53   :  { %362 = vmatprep.subr.bf16.mxu1 %v477_v0 }
  0x56   :  { %364 = vmatpush3.bf16.msra.mxu1 %v363_v30 }
 0x112   :  { %v145_v32 = vpop.f32.mrb[0].mxu0 }
 0x113   :  { %v146_v33 = vadd.f32 %v269_v31, %v145_v32  ;;  %v302_v34 = vpop.f32.mrb[1].mxu0 }
 0x115   :  { %v149_v35 = vmax.f32 %v146_v33, 0.0 }
 0x117   :  { %336 = vmatmul.mubr.f32.vlgmr.msra.gmra.mrb[0].mxu1 %v149_v35 }
 0x1ea   :  { %v239_v37 = vpop.f32.mrb[0].mxu1 }
 0x1eb   :  { %v240_v38 = vadd.f32 %v272_v36, %v239_v37  ;;  %v337_v39 = vpop.f32.mrb[1].mxu1 }
 0x1ed   :  { %243 = vmax.xlane.f32.xlu0 %v240_v38 }
 0x27a   :  { %v244_v40 = vpop.xlane.xlu0 %243 }
 0x27b   :  { %v245_v41 = vsub.f32 %v240_v38, %v244_v40 }
 0x27d   :  { %v246_v42 = vmul.f32 1.442695, %v245_v41 }
 0x27f   :  { %374 = vpow2.f32 %v246_v42 }
 0x289   :  { %v375_v43 = vpop.eup %374 }
 0x28a   :  { %248 = vadd.xlane.f32.xlu0 %v375_v43 }
 0x317   :  { %v249_v44 = vpop.xlane.xlu0 %248 }
 0x318   :  { %376 = vrcp.f32 %v249_v44 }
 0x322   :  { %v377_v45 = vpop.eup %376 }
 0x323   :  { %v251_v46 = vmul.f32 %v377_v45, %v375_v43 }
 0x325   :  { %252 = vst [vmem:[#allocation8] sm:$0xff] %v251_v46 }
 0x326   :  { %455 = shalt.err (!%p452_p0)
}
 0x327   :  { %s456_s10 = scalar_lea.hbm %s576_s5, 128 }
 0x328   :  { %p457_p1 = scmp.ne.s32.totalorder %s576_s5, %s456_s10  ;;  %p460_p2 = scmp.lt.u32.totalorder %s456_s10, %s576_s5 }
 0x32a   :  { %p462_p3 = pnand %p460_p2, %p457_p1 }
 0x32c   :  { %465 = shalt.err (!%p462_p3)
}
 0x32d   :  { %262 = dma.vmem_to_hbm [thread:$0]  %s260_s7, 128, %s576_s5, [#allocation4]  }
 0x32e   :  { %470 = dma.done.wait [#allocation4], 128  }
 0x32f   :  { %471 = vsyncadd [#allocation4], 4294967168 }
 0x330   :  { %266 = vsyncpa [#allocation3], 1 }
 0x331   :  { %267 = vsyncpa [#allocation6], 1 }
 0x332   :  { %268 = vsyncpa [#allocation4], 1 }

</bundles_post_ra>
